<compile_context>
chip_gen: v6e
topology: v6e:2x2x1
jax: 0.10.0
libtpu: 0.0.40
codegen_flags: <defaults>
</compile_context>

<pallas_src>
import functools

import jax
import jax.numpy as jnp
from jax import lax
from jax.experimental import pallas as pl
from jax.experimental.pallas import tpu as pltpu

_LANES = 128
_HIDDEN = 10


def _mlp_kernel(w1_ref, b1_ref, w2_ref, b2_ref, x_ref, o_ref, *, sub, n_sub):
    # Hoist all SMEM scalar reads once per grid step (loop-invariant).
    w1 = [w1_ref[j] for j in range(_HIDDEN)]
    b1 = [b1_ref[j] for j in range(_HIDDEN)]
    w2 = [w2_ref[j] for j in range(_HIDDEN)]
    b2 = b2_ref[0]

    def body(i, carry):
        r = pl.multiple_of(i * sub, sub)
        x = x_ref[pl.ds(r, sub), :]                 # (sub, 128) stays in vregs
        # y = b2h + sum_j w2h[j] * tanh(w1h[j] * x + b1h[j])   (tanh-form sigmoid)
        acc = w2[0] * jnp.tanh(w1[0] * x + b1[0])
        for j in range(1, _HIDDEN):
            acc = acc + w2[j] * jnp.tanh(w1[j] * x + b1[j])
        o_ref[pl.ds(r, sub), :] = (acc + b2).astype(o_ref.dtype)
        return carry

    lax.fori_loop(0, n_sub, body, 0, unroll=True)


def diff_equation_model(x, w1, b1, w2, b2, *, max_block_rows=2048):
    """Pallas forward pass of DiffEquationModel.

    x:  (N, 1) float32
    w1: (1, 10), b1: (1, 10)   (transposed vs torch: in_features x out_features)
    w2: (10, 1), b2: (1, 1)
    returns (N, 1) float32
    """
    n = x.shape[0]

    # --- wrapper-side constant folding (tanh form of sigmoid); free, outside kernel ---
    w1h = (0.5 * w1.reshape(_HIDDEN)).astype(jnp.float32)
    b1h = (0.5 * b1.reshape(_HIDDEN)).astype(jnp.float32)
    w2h = (0.5 * w2.reshape(_HIDDEN)).astype(jnp.float32)
    b2h = (b2.reshape(1) + 0.5 * jnp.sum(w2.reshape(_HIDDEN))).astype(jnp.float32)

    # --- lane-dense (rows, 128) view; pad only to the 8x128 granule ---
    flat = x.reshape(-1).astype(jnp.float32)
    rows = -(-n // _LANES)            # ceil(N / 128)
    rows = -(-rows // 8) * 8          # sublane multiple, >= 8
    total = rows * _LANES
    if total != n:
        flat = jnp.pad(flat, (0, total - n))
    x2d = flat.reshape(rows, _LANES)

    # --- adaptive block size: enough grid steps for both TCs + DMA pipeline ---
    if rows <= 64:
        br, sub = rows, rows
    else:
        sub = 64
        br = ((rows // 8) // sub) * sub          # aim for ~8 grid steps
        br = max(sub, min(max_block_rows, br))
    n_sub = br // sub
    grid = (pl.cdiv(rows, br),)                  # partial last block masked by Pallas

    kernel = functools.partial(_mlp_kernel, sub=sub, n_sub=n_sub)

    out2d = pl.pallas_call(
        kernel,
        out_shape=jax.ShapeDtypeStruct((rows, _LANES), jnp.float32),
        grid=grid,
        in_specs=[
            pl.BlockSpec(memory_space=pltpu.SMEM),          # w1h (10,)
            pl.BlockSpec(memory_space=pltpu.SMEM),          # b1h (10,)
            pl.BlockSpec(memory_space=pltpu.SMEM),          # w2h (10,)
            pl.BlockSpec(memory_space=pltpu.SMEM),          # b2h (1,)
            pl.BlockSpec((br, _LANES), lambda i: (i, 0)),   # lane-dense input block
        ],
        out_specs=pl.BlockSpec((br, _LANES), lambda i: (i, 0)),
        compiler_params=pltpu.CompilerParams(
            dimension_semantics=("parallel",),              # shard row blocks across TCs
            vmem_limit_bytes=32 * 1024 * 1024,              # safe on v5e/v6e/v7x
        ),
    )(w1h, b1h, w2h, b2h, x2d)

    # Drop padding, restore (N, 1).
    return out2d.reshape(-1)[:n].reshape(n, 1).astype(x.dtype)


def init_params(key):
    """Deterministic init mimicking torch.nn.Linear (U(-1/sqrt(fan_in), +))."""
    k1, k2, k3, k4 = jax.random.split(key, 4)
    bound1 = 1.0  # fan_in = 1
    w1 = jax.random.uniform(k1, (1, 10), jnp.float32, -bound1, bound1)
    b1 = jax.random.uniform(k2, (1, 10), jnp.float32, -bound1, bound1)
    bound2 = 1.0 / jnp.sqrt(10.0)  # fan_in = 10
    w2 = jax.random.uniform(k3, (10, 1), jnp.float32, -bound2, bound2)
    b2 = jax.random.uniform(k4, (1, 1), jnp.float32, -bound2, bound2)
    return w1, b1, w2, b2


if __name__ == "__main__":
    key = jax.random.PRNGKey(0)
    kx, kp = jax.random.split(key)
    w1, b1, w2, b2 = init_params(kp)

    def ref_fn(x):
        # Same math as the PyTorch module, kept on the VPU (no matmul precision games).
        h = 1.0 / (1.0 + jnp.exp(-(x * w1.reshape(1, _HIDDEN) + b1.reshape(1, _HIDDEN))))
        return jnp.sum(h * w2.reshape(1, _HIDDEN), axis=1, keepdims=True) + b2.reshape(1, 1)

    # Small batch consistent with the module's forward: (batch, in_features=1).
    x_small = jax.random.normal(kx, (8, 1), jnp.float32)
    y_small = diff_equation_model(x_small, w1, b1, w2, b2)
    jax.block_until_ready(y_small)
    assert y_small.shape == (8, 1)
    assert jnp.allclose(y_small, ref_fn(x_small), atol=1e-5, rtol=1e-5)

    # Non-aligned batch: exercises minimal padding + multi-step grid + partial last block.
    x_big = jax.random.normal(jax.random.PRNGKey(1), (20000, 1), jnp.float32)
    y_big = diff_equation_model(x_big, w1, b1, w2, b2)
    jax.block_until_ready(y_big)
    assert y_big.shape == (20000, 1)
    assert jnp.allclose(y_big, ref_fn(x_big), atol=1e-5, rtol=1e-5)

    print("KERNEL_OK")
</pallas_src>

<mosaic_0001>
module attributes {stable_mosaic.version = 11 : i64} {
  func.func @_mlp_kernel(%arg0: i32, %arg1: memref<10xf32, #tpu.memory_space<smem>>, %arg2: memref<10xf32, #tpu.memory_space<smem>>, %arg3: memref<10xf32, #tpu.memory_space<smem>>, %arg4: memref<1xf32, #tpu.memory_space<smem>>, %arg5: memref<8x128xf32, #tpu.memory_space<vmem>>, %arg6: memref<8x128xf32, #tpu.memory_space<vmem>>) attributes {dimension_semantics = [#tpu.dimension_semantics<parallel>], iteration_bounds = array<i64: 1>, scalar_prefetch = 0 : i64, scratch_operands = 0 : i64, tpu.core_type = #tpu.core_type<tc>, window_params = [{transform_indices = @transform_0, window_bounds = array<i64: 10>}, {transform_indices = @transform_1, window_bounds = array<i64: 10>}, {transform_indices = @transform_2, window_bounds = array<i64: 10>}, {transform_indices = @transform_3, window_bounds = array<i64: 1>}, {transform_indices = @transform_4, window_bounds = array<i64: 8, 128>}, {transform_indices = @transform_5, window_bounds = array<i64: 8, 128>}]} {
    %c0 = arith.constant 0 : index
    %0 = memref.load %arg1[%c0] : memref<10xf32, #tpu.memory_space<smem>>
    %c1 = arith.constant 1 : index
    %1 = memref.load %arg1[%c1] : memref<10xf32, #tpu.memory_space<smem>>
    %c2 = arith.constant 2 : index
    %2 = memref.load %arg1[%c2] : memref<10xf32, #tpu.memory_space<smem>>
    %c3 = arith.constant 3 : index
    %3 = memref.load %arg1[%c3] : memref<10xf32, #tpu.memory_space<smem>>
    %c4 = arith.constant 4 : index
    %4 = memref.load %arg1[%c4] : memref<10xf32, #tpu.memory_space<smem>>
    %c5 = arith.constant 5 : index
    %5 = memref.load %arg1[%c5] : memref<10xf32, #tpu.memory_space<smem>>
    %c6 = arith.constant 6 : index
    %6 = memref.load %arg1[%c6] : memref<10xf32, #tpu.memory_space<smem>>
    %c7 = arith.constant 7 : index
    %7 = memref.load %arg1[%c7] : memref<10xf32, #tpu.memory_space<smem>>
    %c8 = arith.constant 8 : index
    %8 = memref.load %arg1[%c8] : memref<10xf32, #tpu.memory_space<smem>>
    %c9 = arith.constant 9 : index
    %9 = memref.load %arg1[%c9] : memref<10xf32, #tpu.memory_space<smem>>
    %c0_0 = arith.constant 0 : index
    %10 = memref.load %arg2[%c0_0] : memref<10xf32, #tpu.memory_space<smem>>
    %c1_1 = arith.constant 1 : index
    %11 = memref.load %arg2[%c1_1] : memref<10xf32, #tpu.memory_space<smem>>
    %c2_2 = arith.constant 2 : index
    %12 = memref.load %arg2[%c2_2] : memref<10xf32, #tpu.memory_space<smem>>
    %c3_3 = arith.constant 3 : index
    %13 = memref.load %arg2[%c3_3] : memref<10xf32, #tpu.memory_space<smem>>
    %c4_4 = arith.constant 4 : index
    %14 = memref.load %arg2[%c4_4] : memref<10xf32, #tpu.memory_space<smem>>
    %c5_5 = arith.constant 5 : index
    %15 = memref.load %arg2[%c5_5] : memref<10xf32, #tpu.memory_space<smem>>
    %c6_6 = arith.constant 6 : index
    %16 = memref.load %arg2[%c6_6] : memref<10xf32, #tpu.memory_space<smem>>
    %c7_7 = arith.constant 7 : index
    %17 = memref.load %arg2[%c7_7] : memref<10xf32, #tpu.memory_space<smem>>
    %c8_8 = arith.constant 8 : index
    %18 = memref.load %arg2[%c8_8] : memref<10xf32, #tpu.memory_space<smem>>
    %c9_9 = arith.constant 9 : index
    %19 = memref.load %arg2[%c9_9] : memref<10xf32, #tpu.memory_space<smem>>
    %c0_10 = arith.constant 0 : index
    %20 = memref.load %arg3[%c0_10] : memref<10xf32, #tpu.memory_space<smem>>
    %c1_11 = arith.constant 1 : index
    %21 = memref.load %arg3[%c1_11] : memref<10xf32, #tpu.memory_space<smem>>
    %c2_12 = arith.constant 2 : index
    %22 = memref.load %arg3[%c2_12] : memref<10xf32, #tpu.memory_space<smem>>
    %c3_13 = arith.constant 3 : index
    %23 = memref.load %arg3[%c3_13] : memref<10xf32, #tpu.memory_space<smem>>
    %c4_14 = arith.constant 4 : index
    %24 = memref.load %arg3[%c4_14] : memref<10xf32, #tpu.memory_space<smem>>
    %c5_15 = arith.constant 5 : index
    %25 = memref.load %arg3[%c5_15] : memref<10xf32, #tpu.memory_space<smem>>
    %c6_16 = arith.constant 6 : index
    %26 = memref.load %arg3[%c6_16] : memref<10xf32, #tpu.memory_space<smem>>
    %c7_17 = arith.constant 7 : index
    %27 = memref.load %arg3[%c7_17] : memref<10xf32, #tpu.memory_space<smem>>
    %c8_18 = arith.constant 8 : index
    %28 = memref.load %arg3[%c8_18] : memref<10xf32, #tpu.memory_space<smem>>
    %c9_19 = arith.constant 9 : index
    %29 = memref.load %arg3[%c9_19] : memref<10xf32, #tpu.memory_space<smem>>
    %c0_20 = arith.constant 0 : index
    %30 = memref.load %arg4[%c0_20] : memref<1xf32, #tpu.memory_space<smem>>
    %c0_i32 = arith.constant 0 : i32
    %c8_i32 = arith.constant 8 : i32
    %31 = arith.muli %c0_i32, %c8_i32 : i32
    %32 = tpu.assume_multiple %31, 8 : i32
    %33 = arith.index_cast %32 : i32 to index
    %c0_21 = arith.constant 0 : index
    %34 = vector.load %arg5[%33, %c0_21] : memref<8x128xf32, #tpu.memory_space<vmem>>, vector<8x128xf32>
    %35 = vector.broadcast %0 : f32 to vector<8x128xf32>
    %36 = arith.mulf %35, %34 : vector<8x128xf32>
    %37 = vector.broadcast %10 : f32 to vector<8x128xf32>
    %38 = arith.addf %36, %37 : vector<8x128xf32>
    %39 = math.tanh %38 : vector<8x128xf32>
    %40 = vector.broadcast %20 : f32 to vector<8x128xf32>
    %41 = arith.mulf %40, %39 : vector<8x128xf32>
    %42 = vector.broadcast %1 : f32 to vector<8x128xf32>
    %43 = arith.mulf %42, %34 : vector<8x128xf32>
    %44 = vector.broadcast %11 : f32 to vector<8x128xf32>
    %45 = arith.addf %43, %44 : vector<8x128xf32>
    %46 = math.tanh %45 : vector<8x128xf32>
    %47 = vector.broadcast %21 : f32 to vector<8x128xf32>
    %48 = arith.mulf %47, %46 : vector<8x128xf32>
    %49 = arith.addf %41, %48 : vector<8x128xf32>
    %50 = vector.broadcast %2 : f32 to vector<8x128xf32>
    %51 = arith.mulf %50, %34 : vector<8x128xf32>
    %52 = vector.broadcast %12 : f32 to vector<8x128xf32>
    %53 = arith.addf %51, %52 : vector<8x128xf32>
    %54 = math.tanh %53 : vector<8x128xf32>
    %55 = vector.broadcast %22 : f32 to vector<8x128xf32>
    %56 = arith.mulf %55, %54 : vector<8x128xf32>
    %57 = arith.addf %49, %56 : vector<8x128xf32>
    %58 = vector.broadcast %3 : f32 to vector<8x128xf32>
    %59 = arith.mulf %58, %34 : vector<8x128xf32>
    %60 = vector.broadcast %13 : f32 to vector<8x128xf32>
    %61 = arith.addf %59, %60 : vector<8x128xf32>
    %62 = math.tanh %61 : vector<8x128xf32>
    %63 = vector.broadcast %23 : f32 to vector<8x128xf32>
    %64 = arith.mulf %63, %62 : vector<8x128xf32>
    %65 = arith.addf %57, %64 : vector<8x128xf32>
    %66 = vector.broadcast %4 : f32 to vector<8x128xf32>
    %67 = arith.mulf %66, %34 : vector<8x128xf32>
    %68 = vector.broadcast %14 : f32 to vector<8x128xf32>
    %69 = arith.addf %67, %68 : vector<8x128xf32>
    %70 = math.tanh %69 : vector<8x128xf32>
    %71 = vector.broadcast %24 : f32 to vector<8x128xf32>
    %72 = arith.mulf %71, %70 : vector<8x128xf32>
    %73 = arith.addf %65, %72 : vector<8x128xf32>
    %74 = vector.broadcast %5 : f32 to vector<8x128xf32>
    %75 = arith.mulf %74, %34 : vector<8x128xf32>
    %76 = vector.broadcast %15 : f32 to vector<8x128xf32>
    %77 = arith.addf %75, %76 : vector<8x128xf32>
    %78 = math.tanh %77 : vector<8x128xf32>
    %79 = vector.broadcast %25 : f32 to vector<8x128xf32>
    %80 = arith.mulf %79, %78 : vector<8x128xf32>
    %81 = arith.addf %73, %80 : vector<8x128xf32>
    %82 = vector.broadcast %6 : f32 to vector<8x128xf32>
    %83 = arith.mulf %82, %34 : vector<8x128xf32>
    %84 = vector.broadcast %16 : f32 to vector<8x128xf32>
    %85 = arith.addf %83, %84 : vector<8x128xf32>
    %86 = math.tanh %85 : vector<8x128xf32>
    %87 = vector.broadcast %26 : f32 to vector<8x128xf32>
    %88 = arith.mulf %87, %86 : vector<8x128xf32>
    %89 = arith.addf %81, %88 : vector<8x128xf32>
    %90 = vector.broadcast %7 : f32 to vector<8x128xf32>
    %91 = arith.mulf %90, %34 : vector<8x128xf32>
    %92 = vector.broadcast %17 : f32 to vector<8x128xf32>
    %93 = arith.addf %91, %92 : vector<8x128xf32>
    %94 = math.tanh %93 : vector<8x128xf32>
    %95 = vector.broadcast %27 : f32 to vector<8x128xf32>
    %96 = arith.mulf %95, %94 : vector<8x128xf32>
    %97 = arith.addf %89, %96 : vector<8x128xf32>
    %98 = vector.broadcast %8 : f32 to vector<8x128xf32>
    %99 = arith.mulf %98, %34 : vector<8x128xf32>
    %100 = vector.broadcast %18 : f32 to vector<8x128xf32>
    %101 = arith.addf %99, %100 : vector<8x128xf32>
    %102 = math.tanh %101 : vector<8x128xf32>
    %103 = vector.broadcast %28 : f32 to vector<8x128xf32>
    %104 = arith.mulf %103, %102 : vector<8x128xf32>
    %105 = arith.addf %97, %104 : vector<8x128xf32>
    %106 = vector.broadcast %9 : f32 to vector<8x128xf32>
    %107 = arith.mulf %106, %34 : vector<8x128xf32>
    %108 = vector.broadcast %19 : f32 to vector<8x128xf32>
    %109 = arith.addf %107, %108 : vector<8x128xf32>
    %110 = math.tanh %109 : vector<8x128xf32>
    %111 = vector.broadcast %29 : f32 to vector<8x128xf32>
    %112 = arith.mulf %111, %110 : vector<8x128xf32>
    %113 = arith.addf %105, %112 : vector<8x128xf32>
    %114 = vector.broadcast %30 : f32 to vector<8x128xf32>
    %115 = arith.addf %113, %114 : vector<8x128xf32>
    %116 = arith.index_cast %32 : i32 to index
    %c0_22 = arith.constant 0 : index
    %117 = vector.load %arg6[%116, %c0_22] : memref<8x128xf32, #tpu.memory_space<vmem>>, vector<8x128xf32>
    tpu.vector_store %arg6[%116, %c0_22], %115 {strides = array<i32>} : memref<8x128xf32, #tpu.memory_space<vmem>>, vector<8x128xf32>,
    %c1_i32 = arith.constant 1 : i32
    return
  }
  func.func @transform_0(%arg0: i32) -> i32 {
    %c0_i32 = arith.constant 0 : i32
    %c0_i32_0 = arith.constant 0 : i32
    return %c0_i32 : i32
  }
  func.func @transform_1(%arg0: i32) -> i32 {
    %c0_i32 = arith.constant 0 : i32
    %c0_i32_0 = arith.constant 0 : i32
    return %c0_i32 : i32
  }
  func.func @transform_2(%arg0: i32) -> i32 {
    %c0_i32 = arith.constant 0 : i32
    %c0_i32_0 = arith.constant 0 : i32
    return %c0_i32 : i32
  }
  func.func @transform_3(%arg0: i32) -> i32 {
    %c0_i32 = arith.constant 0 : i32
    %c0_i32_0 = arith.constant 0 : i32
    return %c0_i32 : i32
  }
  func.func @transform_4(%arg0: i32) -> (i32, i32) {
    %c0_i32 = arith.constant 0 : i32
    %c0_i32_0 = arith.constant 0 : i32
    return %arg0, %c0_i32 : i32, i32
  }
  func.func @transform_5(%arg0: i32) -> (i32, i32) {
    %c0_i32 = arith.constant 0 : i32
    %c0_i32_0 = arith.constant 0 : i32
    return %arg0, %c0_i32 : i32, i32
  }
}

</mosaic_0001>

<bundles_post_ra>
// kernel: tpu_custom_call.1
= control target key start
LH: loop header
LB: loop body
LE: loop exit
PB: predicated region body
PF: predicated region fallthrough
CT: control target
= control target key end

     0   :  { %11 = vsyncpa [#allocation6], 0  ;;  %s423_s0 = inlined_call_operand.vmem [shape: f32[10], index: 0, kind: input, shape index: {}]   ;;  %s424_s1 = inlined_call_operand.vmem [shape: f32[10], index: 1, kind: input, shape index: {}]   ;;  %s425_s2 = inlined_call_operand.vmem [shape: f32[10], index: 2, kind: input, shape index: {}]   ;;  %s426_s3 = inlined_call_operand.<no memory space> [shape: f32[1], index: 3, kind: input, shape index: {}]   ;;  %s427_s4 = inlined_call_operand.hbm [shape: f32[8,128], index: 4, kind: input, shape index: {}]   ;;  %s428_s5 = inlined_call_operand.hbm [shape: f32[8,128], index: 5, kind: output, shape index: {}]  }
   0x1   :  { %12 = vsyncpa [#allocation8], 0 }
   0x2   :  { %13 = vsyncpa [#allocation4], 0  ;;  %s31_s20 = sshll.u32 %s424_s1, 4  ;;  %s32_s20 = int_to_ptr.vmem [resolvable:$true] %s31_s20 }
   0x3   :  { %14 = vsyncpa [#allocation5], 0  ;;  %s21_s23 = sshll.u32 %s423_s0, 4  ;;  %s253_s24 = scalar_lea.vmem %s32_s20, 16  ;;  %s22_s23 = int_to_ptr.vmem [resolvable:$true] %s21_s23 }
   0x4   :  { %p254_p0 = scmp.ne.s32.totalorder %s32_s20, %s253_s24  ;;  %p258_p1 = scmp.lt.s32.totalorder %s32_s20, %s32_s20 }
   0x5   :  { %p259_p2 = scmp.lt.s32.totalorder %s253_s24, %s253_s24 }
   0x7   :  { %p260_p3 = por %p259_p2, %p258_p1 }
   0x9   :  { %p261_p4 = pnand %p260_p3, %p254_p0 }
   0xb   :  { %264 = shalt.err (!%p261_p4)
}
   0xc   :  { %s337_s25 = smov [#allocation7]   ;;  %s265_s26 = scalar_lea.vmem %s22_s23, 16 }
   0xd   :  { %34 = dma.vmem_to_smem %s32_s20, 16, %s337_s25, [#allocation8]  }
   0xe   :  { %p266_p5 = scmp.ne.s32.totalorder %s22_s23, %s265_s26  ;;  %p270_p6 = scmp.lt.s32.totalorder %s22_s23, %s22_s23 }
   0xf   :  { %p271_p7 = scmp.lt.s32.totalorder %s265_s26, %s265_s26 }
  0x11   :  { %p272_p8 = por %p271_p7, %p270_p6 }
  0x13   :  { %p273_p9 = pnand %p272_p8, %p266_p5 }
  0x15   :  { %276 = shalt.err (!%p273_p9)
}
  0x16   :  { %s338_s1 = smov [#allocation3]   ;;  %s41_s28 = sshll.u32 %s425_s2, 4  ;;  %s42_s28 = int_to_ptr.vmem [resolvable:$true] %s41_s28 }
  0x17   :  { %24 = dma.vmem_to_smem %s22_s23, 16, %s338_s1, [#allocation6]  }
  0x18   :  { %s277_s29 = scalar_lea.vmem %s42_s28, 16  ;;  %p282_p11 = scmp.lt.s32.totalorder %s42_s28, %s42_s28 }
  0x19   :  { %p278_p10 = scmp.ne.s32.totalorder %s42_s28, %s277_s29  ;;  %p283_p12 = scmp.lt.s32.totalorder %s277_s29, %s277_s29 }
  0x1b   :  { %p284_p13 = por %p283_p12, %p282_p11 }
  0x1d   :  { %p285_p0 = pnand %p284_p13, %p278_p10 }
  0x1f   :  { %288 = shalt.err (!%p285_p0)
}
  0x20   :  { %s339_s30 = smov [#allocation9]   ;;  %s340_s6 = smov [#allocation10]  }
  0x21   :  { %44 = dma.vmem_to_smem %s42_s28, 16, %s339_s30, [#allocation8]  }
  0x22   :  { %s53_s7 = sshll.u32 %s340_s6, 4  ;;  %s54_s7 = int_to_ptr.vmem [resolvable:$true] %s53_s7 }
  0x23   :  { %s297_s8 = scalar_lea.vmem %s54_s7, 128  ;;  %p302_p2 = scmp.lt.s32.totalorder %s54_s7, %s54_s7 }
  0x24   :  { %p298_p1 = scmp.ne.s32.totalorder %s54_s7, %s297_s8  ;;  %p303_p3 = scmp.lt.s32.totalorder %s297_s8, %s297_s8 }
  0x26   :  { %p304_p4 = por %p303_p3, %p302_p2 }
  0x28   :  { %p305_p5 = pnand %p304_p4, %p298_p1 }
  0x2a   :  { %308 = shalt.err (!%p305_p5)
}
  0x2b   :  { %56 = dma.hbm_to_vmem [thread:$0]  %s427_s4, 128, %s54_s7, [#allocation4]  }
  0x2c   :  { %329 = dma.done.wait [#allocation6], 16  }
  0x2d   :  { %330 = vsyncadd [#allocation6], 4294967280 }
  0x2e   :  { %331 = dma.done.wait [#allocation8], 32  }
  0x2f   :  { %332 = vsyncadd [#allocation8], 4294967264 }
  0x30   :  { %333 = dma.done.wait [#allocation4], 128  }
  0x31   :  { %334 = vsyncadd [#allocation4], 4294967168 }
  0x32   :  { %69 = sfence }
  0x33   :  { %s70_s10 = sld [smem:[#allocation3]]  ;;  %v101_v0 = vld [vmem:[#allocation10] sm:$0xff] }
  0x34   :  { %s201_s11 = sld [smem:[#allocation3 + $0x1]] }
  0x35   :  { %s202_s12 = sld [smem:[#allocation3 + $0x2]] }
  0x36   :  { %s203_s13 = sld [smem:[#allocation3 + $0x3]] }
  0x37   :  { %s204_s14 = sld [smem:[#allocation3 + $0x4]] }
  0x38   :  { %s384_s15 = sld [smem:[#allocation3 + $0x5]] }
  0x39   :  { %s386_s16 = sld [smem:[#allocation3 + $0x6]]  ;;  %v102_v1 = vstv %s70_s10 }
  0x3a   :  { %s388_s17 = sld [smem:[#allocation3 + $0x7]]  ;;  %v109_v2 = vstv %s201_s11  ;;  %v103_v4 = vmul.f32 %v102_v1, %v101_v0 }
  0x3b   :  { %s390_s18 = sld [smem:[#allocation3 + $0x8]]  ;;  %v117_v3 = vstv %s202_s12  ;;  %v110_v6 = vmul.f32 %v109_v2, %v101_v0 }
  0x3c   :  { %s392_s4 = sld [smem:[#allocation3 + $0x9]]  ;;  %v125_v5 = vstv %s203_s13  ;;  %v118_v8 = vmul.f32 %v117_v3, %v101_v0  ;;  %s341_s13 = smov [#allocation11]  }
  0x3d   :  { %s80_s19 = sld [smem:[#allocation7]]  ;;  %v133_v7 = vstv %s204_s14  ;;  %v126_v12 = vmul.f32 %v125_v5, %v101_v0  ;;  %s190_s14 = sshll.u32 %s341_s13, 4  ;;  %s191_s14 = int_to_ptr.vmem [resolvable:$true] %s190_s14 }
  0x3e   :  { %s210_s20 = sld [smem:[#allocation7 + $0x1]]  ;;  %v141_v9 = vstv %s384_s15  ;;  %v134_v15 = vmul.f32 %v133_v7, %v101_v0  ;;  %s309_s15 = scalar_lea.vmem %s191_s14, 128 }
  0x3f   :  { %s211_s21 = sld [smem:[#allocation7 + $0x2]]  ;;  %v149_v10 = vstv %s386_s16  ;;  %v142_v19 = vmul.f32 %v141_v9, %v101_v0  ;;  %p310_p6 = scmp.ne.s32.totalorder %s191_s14, %s309_s15 }
  0x40   :  { %s212_s22 = sld [smem:[#allocation7 + $0x3]]  ;;  %v157_v16 = vstv %s388_s17  ;;  %v150_v20 = vmul.f32 %v149_v10, %v101_v0  ;;  %p314_p7 = scmp.lt.s32.totalorder %s191_s14, %s191_s14 }
  0x41   :  { %s213_s23 = sld [smem:[#allocation7 + $0x4]]  ;;  %v165_v23 = vstv %s390_s18  ;;  %v158_v26 = vmul.f32 %v157_v16, %v101_v0  ;;  %p315_p8 = scmp.lt.s32.totalorder %s309_s15, %s309_s15 }
  0x42   :  { %s394_s24 = sld [smem:[#allocation7 + $0x5]]  ;;  %v173_v29 = vstv %s392_s4  ;;  %v166_v32 = vmul.f32 %v165_v23, %v101_v0 }
  0x43   :  { %s398_s25 = sld [smem:[#allocation7 + $0x6]]  ;;  %v104_v11 = vstv %s80_s19  ;;  %v174_v37 = vmul.f32 %v173_v29, %v101_v0  ;;  %p316_p9 = por %p315_p8, %p314_p7 }
  0x44   :  { %s400_s26 = sld [smem:[#allocation7 + $0x7]]  ;;  %v105_v13 = vadd.f32 %v104_v11, %v103_v4  ;;  %v111_v14 = vstv %s210_s20 }
  0x45   :  { %s403_s1 = sld [smem:[#allocation7 + $0x8]]  ;;  %v112_v17 = vadd.f32 %v111_v14, %v110_v6  ;;  %v119_v18 = vstv %s211_s21  ;;  %p317_p10 = pnand %p316_p9, %p310_p6 }
  0x46   :  { %s405_s0 = sld [smem:[#allocation7 + $0x9]]  ;;  %233 = vtanh.f32 %v105_v13  ;;  %v120_v21 = vadd.f32 %v119_v18, %v118_v8  ;;  %v127_v22 = vstv %s212_s22 }
  0x47   :  { %235 = vtanh.f32 %v112_v17  ;;  %v128_v24 = vadd.f32 %v127_v22, %v126_v12  ;;  %v135_v25 = vstv %s213_s23  ;;  %s410_s27 = sld [smem:[#allocation9]] }
  0x48   :  { %237 = vtanh.f32 %v120_v21  ;;  %v136_v27 = vadd.f32 %v135_v25, %v134_v15  ;;  %v143_v28 = vstv %s394_s24  ;;  %s219_s28 = sld [smem:[#allocation9 + $0x1]]  ;;  %v181_v15 = vstv %s426_s3 }
  0x49   :  { %239 = vtanh.f32 %v128_v24  ;;  %v144_v30 = vadd.f32 %v143_v28, %v142_v19  ;;  %v151_v31 = vstv %s398_s25  ;;  %s220_s29 = sld [smem:[#allocation9 + $0x2]] }
  0x4a   :  { %241 = vtanh.f32 %v136_v27  ;;  %v152_v33 = vadd.f32 %v151_v31, %v150_v20  ;;  %v159_v34 = vstv %s400_s26  ;;  %s221_s30 = sld [smem:[#allocation9 + $0x3]] }
  0x4b   :  { %243 = vtanh.f32 %v144_v30  ;;  %v160_v35 = vadd.f32 %v159_v34, %v158_v26  ;;  %v167_v36 = vstv %s403_s1  ;;  %s222_s6 = sld [smem:[#allocation9 + $0x4]] }
  0x4c   :  { %v175_v38 = vstv %s405_s0  ;;  %245 = vtanh.f32 %v152_v33  ;;  %v168_v39 = vadd.f32 %v167_v36, %v166_v32  ;;  %s223_s7 = sld [smem:[#allocation9 + $0x5]] }
  0x4d   :  { %247 = vtanh.f32 %v160_v35  ;;  %v176_v40 = vadd.f32 %v175_v38, %v174_v37  ;;  %v107_v41 = vstv %s410_s27  ;;  %s224_s8 = sld [smem:[#allocation9 + $0x6]] }
  0x4e   :  { %249 = vtanh.f32 %v168_v39  ;;  %v114_v42 = vstv %s219_s28  ;;  %s225_s2 = sld [smem:[#allocation9 + $0x7]] }
  0x4f   :  { %v122_v44 = vstv %s220_s29  ;;  %251 = vtanh.f32 %v176_v40  ;;  %s226_s9 = sld [smem:[#allocation9 + $0x8]] }
  0x50   :  { %v130_v47 = vstv %s221_s30  ;;  %s227_s10 = sld [smem:[#allocation9 + $0x9]] }
  0x51   :  { %v138_v52 = vstv %s222_s6 }
  0x52   :  { %v146_v57 = vstv %s223_s7 }
  0x53   :  { %v234_v43 = vpop.eup %233  ;;  %v154_v61 = vstv %s224_s8 }
  0x54   :  { %v236_v45 = vpop.eup %235  ;;  %v108_v46 = vmul.f32 %v234_v43, %v107_v41  ;;  %v162_v1 = vstv %s225_s2 }
  0x55   :  { %v238_v48 = vpop.eup %237  ;;  %v115_v49 = vmul.f32 %v236_v45, %v114_v42  ;;  %v170_v5 = vstv %s226_s9 }
  0x56   :  { %v240_v50 = vpop.eup %239  ;;  %v123_v51 = vmul.f32 %v238_v48, %v122_v44  ;;  %v178_v9 = vstv %s227_s10 }
  0x57   :  { %v242_v53 = vpop.eup %241  ;;  %v116_v54 = vadd.f32 %v115_v49, %v108_v46  ;;  %v131_v55 = vmul.f32 %v240_v50, %v130_v47 }
  0x58   :  { %v244_v56 = vpop.eup %243  ;;  %v139_v59 = vmul.f32 %v242_v53, %v138_v52 }
  0x59   :  { %v124_v58 = vadd.f32 %v123_v51, %v116_v54  ;;  %v246_v60 = vpop.eup %245  ;;  %v147_v63 = vmul.f32 %v244_v56, %v146_v57 }
  0x5a   :  { %v248_v0 = vpop.eup %247  ;;  %v155_v3 = vmul.f32 %v246_v60, %v154_v61 }
  0x5b   :  { %v132_v62 = vadd.f32 %v131_v55, %v124_v58  ;;  %v250_v4 = vpop.eup %249  ;;  %v163_v7 = vmul.f32 %v248_v0, %v162_v1 }
  0x5c   :  { %v252_v8 = vpop.eup %251  ;;  %v171_v11 = vmul.f32 %v250_v4, %v170_v5 }
  0x5d   :  { %v140_v2 = vadd.f32 %v139_v59, %v132_v62  ;;  %v179_v13 = vmul.f32 %v252_v8, %v178_v9 }
  0x5f   :  { %v148_v6 = vadd.f32 %v147_v63, %v140_v2 }
  0x61   :  { %v156_v10 = vadd.f32 %v155_v3, %v148_v6 }
  0x63   :  { %v164_v12 = vadd.f32 %v163_v7, %v156_v10 }
  0x65   :  { %v172_v14 = vadd.f32 %v171_v11, %v164_v12 }
  0x67   :  { %v180_v16 = vadd.f32 %v179_v13, %v172_v14 }
  0x69   :  { %v182_v17 = vadd.f32 %v181_v15, %v180_v16 }
  0x6b   :  { %183 = vst [vmem:[#allocation11] sm:$0xff] %v182_v17 }
  0x6c   :  { %320 = shalt.err (!%p317_p10)
}
  0x6d   :  { %193 = dma.vmem_to_hbm [thread:$0]  %s191_s14, 128, %s428_s5, [#allocation5]  }
  0x6e   :  { %335 = dma.done.wait [#allocation5], 128  }
  0x6f   :  { %336 = vsyncadd [#allocation5], 4294967168 }
  0x70   :  { %197 = vsyncpa [#allocation4], 1 }
  0x71   :  { %198 = vsyncpa [#allocation5], 1 }
  0x72   :  { %199 = vsyncpa [#allocation6], 1 }
  0x73   :  { %200 = vsyncpa [#allocation8], 1 }

</bundles_post_ra>
